<compile_context>
chip_gen: v5e
topology: v5e:2x2
jax: 0.10.0
libtpu: 0.0.40
codegen_flags: <defaults>
</compile_context>

<pallas_src>
import functools

import jax
import jax.numpy as jnp
from jax.experimental import pallas as pl
from jax.experimental.pallas import tpu as pltpu

FEATURES = 4
HIDDEN = 4
LANES = 128          # lane-dense padded output width
SLAB_ROWS = 16       # packed parameter slab rows (multiple of 8)

# Packed parameter slab layout (rows x 128 lanes, f32):
#   rows  0..3 : W1 (4x4)        in lanes 0:4
#   row   4    : b1              in lanes 0:4
#   rows  5..8 : W2 (4x4)        in lanes 0:4
#   row   9    : b2              in lanes 0:4
#   rows 10..13: W3 (4xout_dim)  in lanes 0:out_dim (zero padded to 128)
#   row  14    : b3              in lanes 0:out_dim (zero padded to 128)
#   row  15    : unused (zeros)


def _mlp_kernel(x_ref, p_ref, o_ref):
    # x_ref: (TB, 4) f32; p_ref: (16, 128) f32; o_ref: (TB, 128) f32
    x = x_ref[...]
    p = p_ref[...]

    # fc1 + ReLU  (accumulator starts at the bias row -> bias folded into FMAs)
    h1 = p[4:5, 0:HIDDEN]                              # (1, 4) b1
    for k in range(FEATURES):
        h1 = h1 + x[:, k:k + 1] * p[k:k + 1, 0:HIDDEN]
    h1 = jnp.maximum(h1, 0.0)                          # (TB, 4)

    # fc2 + ReLU
    h2 = p[9:10, 0:HIDDEN]                             # (1, 4) b2
    for k in range(HIDDEN):
        h2 = h2 + h1[:, k:k + 1] * p[5 + k:6 + k, 0:HIDDEN]
    h2 = jnp.maximum(h2, 0.0)                          # (TB, 4)

    # fc3 (no activation) — lane-dense 128-wide padded output
    out = p[14:15, :]                                  # (1, 128) padded b3
    for k in range(HIDDEN):
        out = out + h2[:, k:k + 1] * p[10 + k:11 + k, :]
    o_ref[...] = out                                   # full-vreg (unmasked) stores


def _round_up(n, m):
    return ((n + m - 1) // m) * m


def pack_params(params):
    """Pack w1/b1/w2/b2/w3/b3 into one (16, 128) f32 slab (single DMA)."""
    out_dim = params["w3"].shape[1]
    assert out_dim <= LANES, "outshape > 128 not supported by this packing"
    slab = jnp.zeros((SLAB_ROWS, LANES), jnp.float32)
    slab = slab.at[0:4, 0:HIDDEN].set(params["w1"].astype(jnp.float32))
    slab = slab.at[4, 0:HIDDEN].set(params["b1"].astype(jnp.float32))
    slab = slab.at[5:9, 0:HIDDEN].set(params["w2"].astype(jnp.float32))
    slab = slab.at[9, 0:HIDDEN].set(params["b2"].astype(jnp.float32))
    slab = slab.at[10:14, 0:out_dim].set(params["w3"].astype(jnp.float32))
    slab = slab.at[14, 0:out_dim].set(params["b3"].astype(jnp.float32))
    return slab


@functools.partial(jax.jit, static_argnames=("out_dim",))
def _net_forward_impl(x, slab, out_dim):
    B = x.shape[0]

    # Batch tile: up to 512 rows per grid step, rounded to sublane multiple.
    TB = min(512, _round_up(B, 8))
    padded_B = _round_up(B, TB)
    if padded_B != B:
        x = jnp.pad(x, ((0, padded_B - B), (0, 0)))

    grid = (padded_B // TB,)

    out_padded = pl.pallas_call(
        _mlp_kernel,
        out_shape=jax.ShapeDtypeStruct((padded_B, LANES), jnp.float32),
        grid=grid,
        in_specs=[
            pl.BlockSpec((TB, FEATURES), lambda i: (i, 0)),      # x batch tile
            pl.BlockSpec((SLAB_ROWS, LANES), lambda i: (0, 0)),  # packed params
        ],
        out_specs=pl.BlockSpec((TB, LANES), lambda i: (i, 0)),
        compiler_params=pltpu.CompilerParams(
            dimension_semantics=("parallel",)),                  # shard across TCs (v7x)
    )(x, slab)

    return out_padded[:B, :out_dim]


def net_forward(x, params):
    """Run the fused 3-layer MLP Pallas kernel.

    x:      (B, FEATURES) float32
    params: dict with w1 (4,4), b1 (4,), w2 (4,4), b2 (4,), w3 (4,out), b3 (out,)
            (weights stored as (in_features, out_features), i.e. pre-transposed
            relative to torch.nn.Linear.weight)
    """
    out_dim = params["w3"].shape[1]
    slab = pack_params(params)
    return _net_forward_impl(x.astype(jnp.float32), slab, out_dim)


def init_params(key, outshape):
    """Mirror the PyTorch module's init: weights ~ Normal(0, 0.1); biases use
    nn.Linear's default U(-1/sqrt(fan_in), 1/sqrt(fan_in)). Weights stored as
    (in_features, out_features)."""
    k = jax.random.split(key, 6)

    def w(kk, fan_in, fan_out):
        return (0.1 * jax.random.normal(kk, (fan_in, fan_out))).astype(jnp.float32)

    def b(kk, fan_in, fan_out):
        bound = 1.0 / jnp.sqrt(jnp.float32(fan_in))
        return jax.random.uniform(kk, (fan_out,), jnp.float32, -bound, bound)

    return {
        "w1": w(k[0], FEATURES, HIDDEN), "b1": b(k[1], FEATURES, HIDDEN),
        "w2": w(k[2], HIDDEN, HIDDEN),   "b2": b(k[3], HIDDEN, HIDDEN),
        "w3": w(k[4], HIDDEN, outshape), "b3": b(k[5], HIDDEN, outshape),
    }


if __name__ == "__main__":
    key = jax.random.PRNGKey(0)
    k_x, k_p = jax.random.split(key)

    OUTSHAPE = 6   # e.g. number of actions for the agent
    BATCH = 8      # small demo batch; kernel tiles/shards larger batches

    x = jax.random.normal(k_x, (BATCH, FEATURES), dtype=jnp.float32)
    params = init_params(k_p, OUTSHAPE)

    out = net_forward(x, params)
    out = jax.block_until_ready(out)

    # Pure-JAX reference check of the same math.
    def ref(x, p):
        h = jnp.maximum(x @ p["w1"] + p["b1"], 0.0)
        h = jnp.maximum(h @ p["w2"] + p["b2"], 0.0)
        return h @ p["w3"] + p["b3"]

    expected = ref(x, params)
    assert out.shape == (BATCH, OUTSHAPE)
    assert jnp.allclose(out, expected, atol=1e-5, rtol=1e-5)

    print("KERNEL_OK")
</pallas_src>

<mosaic_0001>
module attributes {stable_mosaic.version = 11 : i64} {
  func.func @_mlp_kernel(%arg0: i32, %arg1: memref<8x4xf32, #tpu.memory_space<vmem>>, %arg2: memref<16x128xf32, #tpu.memory_space<vmem>>, %arg3: memref<8x128xf32, #tpu.memory_space<vmem>>) attributes {dimension_semantics = [#tpu.dimension_semantics<parallel>], iteration_bounds = array<i64: 1>, scalar_prefetch = 0 : i64, scratch_operands = 0 : i64, tpu.core_type = #tpu.core_type<tc>, window_params = [{transform_indices = @transform_0, window_bounds = array<i64: 8, 4>}, {pipeline_mode = #tpu.pipeline_mode<synchronous>, transform_indices = @transform_1, window_bounds = array<i64: 16, 128>}, {transform_indices = @transform_2, window_bounds = array<i64: 8, 128>}]} {
    %c0 = arith.constant 0 : index
    %c0_0 = arith.constant 0 : index
    %0 = vector.load %arg1[%c0, %c0_0] : memref<8x4xf32, #tpu.memory_space<vmem>>, vector<8x4xf32>
    %c0_1 = arith.constant 0 : index
    %c0_2 = arith.constant 0 : index
    %1 = vector.load %arg2[%c0_1, %c0_2] : memref<16x128xf32, #tpu.memory_space<vmem>>, vector<16x128xf32>
    %2 = vector.extract_strided_slice %1 {offsets = [4, 0], sizes = [1, 4], strides = [1, 1]} : vector<16x128xf32> to vector<1x4xf32>
    %3 = vector.extract_strided_slice %0 {offsets = [0, 0], sizes = [8, 1], strides = [1, 1]} : vector<8x4xf32> to vector<8x1xf32>
    %4 = vector.extract_strided_slice %1 {offsets = [0, 0], sizes = [1, 4], strides = [1, 1]} : vector<16x128xf32> to vector<1x4xf32>
    %5 = vector.broadcast %3 : vector<8x1xf32> to vector<8x4xf32>
    %6 = vector.broadcast %4 : vector<1x4xf32> to vector<8x4xf32>
    %7 = arith.mulf %5, %6 : vector<8x4xf32>
    %8 = vector.broadcast %2 : vector<1x4xf32> to vector<8x4xf32>
    %9 = arith.addf %8, %7 : vector<8x4xf32>
    %10 = vector.extract_strided_slice %0 {offsets = [0, 1], sizes = [8, 1], strides = [1, 1]} : vector<8x4xf32> to vector<8x1xf32>
    %11 = vector.extract_strided_slice %1 {offsets = [1, 0], sizes = [1, 4], strides = [1, 1]} : vector<16x128xf32> to vector<1x4xf32>
    %12 = vector.broadcast %10 : vector<8x1xf32> to vector<8x4xf32>
    %13 = vector.broadcast %11 : vector<1x4xf32> to vector<8x4xf32>
    %14 = arith.mulf %12, %13 : vector<8x4xf32>
    %15 = arith.addf %9, %14 : vector<8x4xf32>
    %16 = vector.extract_strided_slice %0 {offsets = [0, 2], sizes = [8, 1], strides = [1, 1]} : vector<8x4xf32> to vector<8x1xf32>
    %17 = vector.extract_strided_slice %1 {offsets = [2, 0], sizes = [1, 4], strides = [1, 1]} : vector<16x128xf32> to vector<1x4xf32>
    %18 = vector.broadcast %16 : vector<8x1xf32> to vector<8x4xf32>
    %19 = vector.broadcast %17 : vector<1x4xf32> to vector<8x4xf32>
    %20 = arith.mulf %18, %19 : vector<8x4xf32>
    %21 = arith.addf %15, %20 : vector<8x4xf32>
    %22 = vector.extract_strided_slice %0 {offsets = [0, 3], sizes = [8, 1], strides = [1, 1]} : vector<8x4xf32> to vector<8x1xf32>
    %23 = vector.extract_strided_slice %1 {offsets = [3, 0], sizes = [1, 4], strides = [1, 1]} : vector<16x128xf32> to vector<1x4xf32>
    %24 = vector.broadcast %22 : vector<8x1xf32> to vector<8x4xf32>
    %25 = vector.broadcast %23 : vector<1x4xf32> to vector<8x4xf32>
    %26 = arith.mulf %24, %25 : vector<8x4xf32>
    %27 = arith.addf %21, %26 : vector<8x4xf32>
    %cst = arith.constant 0.000000e+00 : f32
    %28 = vector.broadcast %cst : f32 to vector<8x4xf32>
    %29 = arith.maximumf %27, %28 : vector<8x4xf32>
    %30 = vector.extract_strided_slice %1 {offsets = [9, 0], sizes = [1, 4], strides = [1, 1]} : vector<16x128xf32> to vector<1x4xf32>
    %31 = vector.extract_strided_slice %29 {offsets = [0, 0], sizes = [8, 1], strides = [1, 1]} : vector<8x4xf32> to vector<8x1xf32>
    %32 = vector.extract_strided_slice %1 {offsets = [5, 0], sizes = [1, 4], strides = [1, 1]} : vector<16x128xf32> to vector<1x4xf32>
    %33 = vector.broadcast %31 : vector<8x1xf32> to vector<8x4xf32>
    %34 = vector.broadcast %32 : vector<1x4xf32> to vector<8x4xf32>
    %35 = arith.mulf %33, %34 : vector<8x4xf32>
    %36 = vector.broadcast %30 : vector<1x4xf32> to vector<8x4xf32>
    %37 = arith.addf %36, %35 : vector<8x4xf32>
    %38 = vector.extract_strided_slice %29 {offsets = [0, 1], sizes = [8, 1], strides = [1, 1]} : vector<8x4xf32> to vector<8x1xf32>
    %39 = vector.extract_strided_slice %1 {offsets = [6, 0], sizes = [1, 4], strides = [1, 1]} : vector<16x128xf32> to vector<1x4xf32>
    %40 = vector.broadcast %38 : vector<8x1xf32> to vector<8x4xf32>
    %41 = vector.broadcast %39 : vector<1x4xf32> to vector<8x4xf32>
    %42 = arith.mulf %40, %41 : vector<8x4xf32>
    %43 = arith.addf %37, %42 : vector<8x4xf32>
    %44 = vector.extract_strided_slice %29 {offsets = [0, 2], sizes = [8, 1], strides = [1, 1]} : vector<8x4xf32> to vector<8x1xf32>
    %45 = vector.extract_strided_slice %1 {offsets = [7, 0], sizes = [1, 4], strides = [1, 1]} : vector<16x128xf32> to vector<1x4xf32>
    %46 = vector.broadcast %44 : vector<8x1xf32> to vector<8x4xf32>
    %47 = vector.broadcast %45 : vector<1x4xf32> to vector<8x4xf32>
    %48 = arith.mulf %46, %47 : vector<8x4xf32>
    %49 = arith.addf %43, %48 : vector<8x4xf32>
    %50 = vector.extract_strided_slice %29 {offsets = [0, 3], sizes = [8, 1], strides = [1, 1]} : vector<8x4xf32> to vector<8x1xf32>
    %51 = vector.extract_strided_slice %1 {offsets = [8, 0], sizes = [1, 4], strides = [1, 1]} : vector<16x128xf32> to vector<1x4xf32>
    %52 = vector.broadcast %50 : vector<8x1xf32> to vector<8x4xf32>
    %53 = vector.broadcast %51 : vector<1x4xf32> to vector<8x4xf32>
    %54 = arith.mulf %52, %53 : vector<8x4xf32>
    %55 = arith.addf %49, %54 : vector<8x4xf32>
    %cst_3 = arith.constant 0.000000e+00 : f32
    %56 = vector.broadcast %cst_3 : f32 to vector<8x4xf32>
    %57 = arith.maximumf %55, %56 : vector<8x4xf32>
    %58 = vector.extract_strided_slice %1 {offsets = [14, 0], sizes = [1, 128], strides = [1, 1]} : vector<16x128xf32> to vector<1x128xf32>
    %59 = vector.extract_strided_slice %57 {offsets = [0, 0], sizes = [8, 1], strides = [1, 1]} : vector<8x4xf32> to vector<8x1xf32>
    %60 = vector.extract_strided_slice %1 {offsets = [10, 0], sizes = [1, 128], strides = [1, 1]} : vector<16x128xf32> to vector<1x128xf32>
    %61 = vector.broadcast %59 : vector<8x1xf32> to vector<8x128xf32>
    %62 = vector.broadcast %60 : vector<1x128xf32> to vector<8x128xf32>
    %63 = arith.mulf %61, %62 : vector<8x128xf32>
    %64 = vector.broadcast %58 : vector<1x128xf32> to vector<8x128xf32>
    %65 = arith.addf %64, %63 : vector<8x128xf32>
    %66 = vector.extract_strided_slice %57 {offsets = [0, 1], sizes = [8, 1], strides = [1, 1]} : vector<8x4xf32> to vector<8x1xf32>
    %67 = vector.extract_strided_slice %1 {offsets = [11, 0], sizes = [1, 128], strides = [1, 1]} : vector<16x128xf32> to vector<1x128xf32>
    %68 = vector.broadcast %66 : vector<8x1xf32> to vector<8x128xf32>
    %69 = vector.broadcast %67 : vector<1x128xf32> to vector<8x128xf32>
    %70 = arith.mulf %68, %69 : vector<8x128xf32>
    %71 = arith.addf %65, %70 : vector<8x128xf32>
    %72 = vector.extract_strided_slice %57 {offsets = [0, 2], sizes = [8, 1], strides = [1, 1]} : vector<8x4xf32> to vector<8x1xf32>
    %73 = vector.extract_strided_slice %1 {offsets = [12, 0], sizes = [1, 128], strides = [1, 1]} : vector<16x128xf32> to vector<1x128xf32>
    %74 = vector.broadcast %72 : vector<8x1xf32> to vector<8x128xf32>
    %75 = vector.broadcast %73 : vector<1x128xf32> to vector<8x128xf32>
    %76 = arith.mulf %74, %75 : vector<8x128xf32>
    %77 = arith.addf %71, %76 : vector<8x128xf32>
    %78 = vector.extract_strided_slice %57 {offsets = [0, 3], sizes = [8, 1], strides = [1, 1]} : vector<8x4xf32> to vector<8x1xf32>
    %79 = vector.extract_strided_slice %1 {offsets = [13, 0], sizes = [1, 128], strides = [1, 1]} : vector<16x128xf32> to vector<1x128xf32>
    %80 = vector.broadcast %78 : vector<8x1xf32> to vector<8x128xf32>
    %81 = vector.broadcast %79 : vector<1x128xf32> to vector<8x128xf32>
    %82 = arith.mulf %80, %81 : vector<8x128xf32>
    %83 = arith.addf %77, %82 : vector<8x128xf32>
    %c0_4 = arith.constant 0 : index
    %c0_5 = arith.constant 0 : index
    %84 = vector.load %arg3[%c0_4, %c0_5] : memref<8x128xf32, #tpu.memory_space<vmem>>, vector<8x128xf32>
    tpu.vector_store %arg3[%c0_4, %c0_5], %83 {strides = array<i32>} : memref<8x128xf32, #tpu.memory_space<vmem>>, vector<8x128xf32>,
    return
  }
  func.func @transform_0(%arg0: i32) -> (i32, i32) {
    %c0_i32 = arith.constant 0 : i32
    %c0_i32_0 = arith.constant 0 : i32
    return %arg0, %c0_i32 : i32, i32
  }
  func.func @transform_1(%arg0: i32) -> (i32, i32) {
    %c0_i32 = arith.constant 0 : i32
    %c0_i32_0 = arith.constant 0 : i32
    %c0_i32_1 = arith.constant 0 : i32
    return %c0_i32, %c0_i32_0 : i32, i32
  }
  func.func @transform_2(%arg0: i32) -> (i32, i32) {
    %c0_i32 = arith.constant 0 : i32
    %c0_i32_0 = arith.constant 0 : i32
    return %arg0, %c0_i32 : i32, i32
  }
}

</mosaic_0001>

<bundles_post_ra>
// kernel: _net_forward_impl.1
= control target key start
LH: loop header
LB: loop body
LE: loop exit
PB: predicated region body
PF: predicated region fallthrough
CT: control target
= control target key end

     0   :  { %7 = vsyncpa [#allocation3], 0  ;;  %s246_s0 = inlined_call_operand.vmem [shape: f32[8,4], index: 0, kind: input, shape index: {}]   ;;  %s247_s1 = inlined_call_operand.hbm [shape: f32[16,128], index: 1, kind: input, shape index: {}]   ;;  %s248_s2 = inlined_call_operand.hbm [shape: f32[8,128], index: 2, kind: output, shape index: {}]  }
   0x1   :  { %8 = vsyncpa [#allocation4], 0  ;;  %s15_s11 = sshll.u32 %s247_s1, 4  ;;  %s214_s12 = smov [#allocation2]   ;;  %s16_s11 = int_to_ptr.hbm [resolvable:$true] %s15_s11 }
   0x2   :  { %s17_s13 = sshll.u32 %s214_s12, 4  ;;  %s215_s14 = smov 128   ;;  %s18_s13 = int_to_ptr.vmem [resolvable:$true] %s17_s13 }
   0x3   :  { %s216_s15 = smov 8  }
   0x4   :  { %23 = dma.hbm_to_vmem [thread:$0]  %s16_s11, 256, %s18_s13, [#allocation3], %s215_s14, %s215_s14, %s216_s15  }
   0x5   :  { %210 = dma.done.wait [#allocation3], 256  }
   0x6   :  { %211 = vsyncadd [#allocation3], 4294967040  ;;  %v217_v0 = vmov 0   ;;  %v218_v1 = vmov 2   ;;  %v28_v2 = vld [vmem:[%s246_s0] sm:$0xff]  ;;  %v219_v3 = vmov 1  }
   0x7   :  { %149 = vset.pattern.permute.xlu0 %v217_v0  ;;  %151 = vset.pattern.permute.xlu1 %v218_v1  ;;  %v220_v4 = vmov 3   ;;  %v29_v5 = vld [vmem:[#allocation2] sm:$0xff]  ;;  %v30_v27 = vld [vmem:[#allocation2 + $0x8] sm:$0xff]  ;;  %s221_s0 = smov [#allocation5]   ;;  %s131_s20 = sshll.u32 %s248_s2, 4  ;;  %s132_s20 = int_to_ptr.hbm [resolvable:$true] %s131_s20 }
   0x8   :  { %153 = vset.pattern.permute.xlu2 %v217_v0  ;;  %33 = vperm.xlu0 %149, %v28_v2   ;;  %v36_v8 = vperm.slane %v29_v5, 0  ;;  %v38_v9 = vperm.slane %v29_v5, 4  ;;  %v44_v11 = vperm.slane %v29_v5, 1  ;;  %v51_v12 = vperm.slane %v29_v5, 2  ;;  %s129_s1 = sshll.u32 %s221_s0, 4  ;;  %s130_s1 = int_to_ptr.vmem [resolvable:$true] %s129_s1 }
   0x9   :  { %48 = vperm.xlu1 %151, %v28_v2   ;;  %v58_v13 = vperm.slane %v29_v5, 3  ;;  %v67_v26 = vperm.slane %v29_v5, 5  ;;  %v75_v28 = vperm.slane %v29_v5, 6  ;;  %v69_v29 = vperm.slane %v30_v27, 1 }
   0xa   :  { %v82_v32 = vperm.slane %v29_v5, 7  ;;  %v89_v34 = vperm.slane %v30_v27, 0  ;;  %v98_v43 = vperm.slane %v30_v27, 2  ;;  %v106_v44 = vperm.slane %v30_v27, 3 }
   0xb   :  { %v100_v46 = vperm.slane %v30_v27, 6  ;;  %v113_v49 = vperm.slane %v30_v27, 4  ;;  %v120_v54 = vperm.slane %v30_v27, 5 }
  0x10   :  { %150 = vset.pattern.permute.xlu0 %v219_v3 }
  0x11   :  { %152 = vset.pattern.permute.xlu1 %v220_v4  ;;  %41 = vperm.xlu0 %150, %v28_v2  }
  0x12   :  { %55 = vperm.xlu1 %152, %v28_v2  }
  0x19   :  { %157 = vset.pattern.permute.xlu0 %v217_v0 }
  0x1a   :  { %155 = vset.pattern.permute.xlu1 %v218_v1 }
  0x7a   :  { %v34_v6 = vpop.permute.xlu0 %33 }
  0x7b   :  { %v49_v7 = vpop.permute.xlu1 %48  ;;  %v37_v10 = vmul.f32 %v36_v8, %v34_v6 }
  0x7c   :  { %v52_v18 = vmul.f32 %v51_v12, %v49_v7 }
  0x7d   :  { %v39_v16 = vadd.f32 %v38_v9, %v37_v10 }
  0x83   :  { %v42_v14 = vpop.permute.xlu0 %41 }
  0x84   :  { %v56_v15 = vpop.permute.xlu1 %55  ;;  %v45_v17 = vmul.f32 %v44_v11, %v42_v14 }
  0x85   :  { %v59_v20 = vmul.f32 %v58_v13, %v56_v15 }
  0x86   :  { %v46_v19 = vadd.f32 %v45_v17, %v39_v16 }
  0x88   :  { %v53_v21 = vadd.f32 %v52_v18, %v46_v19 }
  0x8a   :  { %v60_v22 = vadd.f32 %v59_v20, %v53_v21 }
  0x8c   :  { %v61_v23 = vmax.f32 %v60_v22, 0.0 }
  0x8e   :  { %79 = vperm.xlu1 %155, %v61_v23   ;;  %64 = vperm.xlu2 %153, %v61_v23  }
  0x96   :  { %154 = vset.pattern.permute.xlu2 %v219_v3  ;;  %158 = vset.pattern.permute.xlu1 %v219_v3 }
  0x97   :  { %72 = vperm.xlu2 %154, %v61_v23  }
  0x9f   :  { %156 = vset.pattern.permute.xlu2 %v220_v4 }
  0xa0   :  { %86 = vperm.xlu2 %156, %v61_v23  }
  0xa8   :  { %159 = vset.pattern.permute.xlu2 %v218_v1 }
  0xe8   :  { %v65_v24 = vpop.permute.xlu2 %64 }
  0xe9   :  { %v68_v30 = vmul.f32 %v67_v26, %v65_v24 }
  0xeb   :  { %v70_v33 = vadd.f32 %v69_v29, %v68_v30 }
  0xf1   :  { %v73_v25 = vpop.permute.xlu2 %72 }
  0xf2   :  { %v76_v31 = vmul.f32 %v75_v28, %v73_v25 }
  0xf4   :  { %v77_v37 = vadd.f32 %v76_v31, %v70_v33 }
  0xfa   :  { %v87_v35 = vpop.permute.xlu2 %86 }
  0xfb   :  { %v90_v39 = vmul.f32 %v89_v34, %v87_v35 }
 0x100   :  { %v80_v36 = vpop.permute.xlu1 %79 }
 0x101   :  { %v83_v38 = vmul.f32 %v82_v32, %v80_v36 }
 0x103   :  { %v84_v40 = vadd.f32 %v83_v38, %v77_v37 }
 0x105   :  { %v91_v41 = vadd.f32 %v90_v39, %v84_v40 }
 0x107   :  { %v92_v42 = vmax.f32 %v91_v41, 0.0 }
 0x109   :  { %110 = vperm.xlu2 %159, %v92_v42   ;;  %103 = vperm.xlu1 %158, %v92_v42  }
 0x10a   :  { %95 = vperm.xlu0 %157, %v92_v42  }
 0x111   :  { %160 = vset.pattern.permute.xlu1 %v220_v4 }
 0x112   :  { %117 = vperm.xlu1 %160, %v92_v42   ;;  %161 = vset.pattern.permute.xlu0 %v220_v4 }
 0x163   :  { %v111_v52 = vpop.permute.xlu2 %110 }
 0x164   :  { %v114_v55 = vmul.f32 %v113_v49, %v111_v52 }
 0x17b   :  { %v104_v45 = vpop.permute.xlu1 %103 }
 0x17c   :  { %v96_v47 = vpop.permute.xlu0 %95  ;;  %v107_v50 = vmul.f32 %v106_v44, %v104_v45 }
 0x17d   :  { %v99_v48 = vmul.f32 %v98_v43, %v96_v47 }
 0x17f   :  { %v101_v51 = vadd.f32 %v100_v46, %v99_v48 }
 0x181   :  { %v108_v53 = vadd.f32 %v107_v50, %v101_v51 }
 0x183   :  { %v115_v57 = vadd.f32 %v114_v55, %v108_v53 }
 0x184   :  { %v118_v56 = vpop.permute.xlu1 %117 }
 0x185   :  { %v121_v58 = vmul.f32 %v120_v54, %v118_v56 }
 0x187   :  { %v122_v59 = vadd.f32 %v121_v58, %v115_v57 }
 0x189   :  { %123 = vst [vmem:[#allocation5] sm:$0xff] %v122_v59 }
 0x18a   :  { %134 = dma.vmem_to_hbm [thread:$0]  %s130_s1, 128, %s132_s20, [#allocation4]  }
 0x18b   :  { %212 = dma.done.wait [#allocation4], 128  }
 0x18c   :  { %213 = vsyncadd [#allocation4], 4294967168 }
 0x18d   :  { %139 = vsyncpa [#allocation3], 1 }
 0x18e   :  { %140 = vsyncpa [#allocation4], 1 }

</bundles_post_ra>
